<compile_context>
chip_gen: v5e
topology: v5e:2x2
jax: 0.10.0
libtpu: 0.0.40
codegen_flags: <defaults>
</compile_context>

<pallas_src>
import functools
import numpy as np
import jax
import jax.numpy as jnp
from jax.experimental import pallas as pl
from jax.experimental.pallas import tpu as pltpu


# ----------------------------- config (small, consistent with forward) -------------
BATCH   = 2          # graphs
IN_CH   = 4          # conv1d_1 in_channels ("nodes per graph")
HID_DIM = 16         # hidden.shape[1]
X_DIM   = 16         # x.shape[1]
CONCAT  = HID_DIM + X_DIM

CONV1 = dict(in_channels=IN_CH, out_channels=8, kernel_size=3, padding=1)
CONV2 = dict(in_channels=8,     out_channels=8, kernel_size=3, padding=1)
MP1   = dict(kernel_size=2, stride=2)
MP2   = dict(kernel_size=2, stride=2)
FC1_IN_LEN = CONCAT     # fc_1_size
FC2_IN_LEN = HID_DIM    # fc_2_size


def get_conv_mp_out_size(in_size, last_layer, mps):
    size = in_size
    for mp in mps:
        size = round((size - mp['kernel_size']) / mp['stride'] + 1)
    size = size + 1 if size % 2 != 0 else size
    return int(size * last_layer['out_channels'])


# ----------------------------- constant 0/1 matrices (numpy, trace-time) ------------
def _shift_mats(L, K, pad):
    """S[k] of shape (L, L) such that (t @ S[k])[:, j] = t[:, j + k - pad] (zero OOB)."""
    S = np.zeros((K, L, L), np.float32)
    for k in range(K):
        off = k - pad
        for j in range(L):
            i = j + off
            if 0 <= i < L:
                S[k, i, j] = 1.0
    return S


def _pool_selectors(L, kernel_size=2, stride=2):
    """Even/odd column selectors implementing MaxPool1d(kernel=2, stride=2)."""
    assert kernel_size == 2 and stride == 2, "selector builder specialized for kernel=stride=2"
    Lo = (L - kernel_size) // stride + 1
    Pe = np.zeros((L, Lo), np.float32)
    Po = np.zeros((L, Lo), np.float32)
    for j in range(Lo):
        Pe[stride * j, j] = 1.0
        Po[stride * j + 1, j] = 1.0
    return Pe, Po


def build_consts(seg_lens, conv2, mp1, mp2):
    """Fold maxpool1 + conv2 'same' shifts + maxpool2 into ONE block-diagonal selector.

    Column layout: slab s = 2*k + p1 (k = conv2 tap, p1 = mp1 parity), each slab is
    [p2=even | p2=odd] x [per-segment L2 blocks].  Returns:
      sel_big (sum(L), K2*2*2*sum(L2)),  seg_off, z_off, seg_L2 (python ints), half=sum(L2)
    """
    K2, pad2 = conv2['kernel_size'], conv2['padding']
    assert mp1['kernel_size'] == 2 and mp1['stride'] == 2
    assert mp2['kernel_size'] == 2 and mp2['stride'] == 2
    seg_off = np.cumsum([0] + list(seg_lens[:-1])).tolist()
    seg_L1 = [(L - mp1['kernel_size']) // mp1['stride'] + 1 for L in seg_lens]
    seg_L2 = [(L1 - mp2['kernel_size']) // mp2['stride'] + 1 for L1 in seg_L1]
    for L, L1 in zip(seg_lens, seg_L1):
        assert L % 2 == 0 and L1 % 2 == 0, "selector builder needs even (pooled) lengths"
    half = int(sum(seg_L2))
    z_off = np.cumsum([0] + seg_L2[:-1]).tolist()
    slab_w = 2 * half
    total_rows = int(sum(seg_lens))

    cache = {}
    for L, L1 in zip(seg_lens, seg_L1):
        if L not in cache:
            P1e, P1o = _pool_selectors(L)
            S2 = _shift_mats(L1, K2, pad2)
            P2e, P2o = _pool_selectors(L1)
            cache[L] = (np.stack([P1e, P1o]), S2, np.stack([P2e, P2o]))

    sel = np.zeros((total_rows, K2 * 2 * slab_w), np.float32)
    for k in range(K2):
        for p1 in range(2):
            slab = 2 * k + p1
            for p2 in range(2):
                for L, r0, L2, c0 in zip(seg_lens, seg_off, seg_L2, z_off):
                    P1, S2, P2 = cache[L]
                    block = P1[p1] @ S2[k] @ P2[p2]                      # (L, L2)
                    col0 = slab * slab_w + p2 * half + c0
                    sel[r0:r0 + L, col0:col0 + L2] = block
    return jnp.asarray(sel), [int(o) for o in seg_off], [int(o) for o in z_off], \
        [int(v) for v in seg_L2], half


# ----------------------------- fused Pallas kernel ----------------------------------
def conv_fused_kernel(xp_ref, w1s_ref, b1_ref, w2f_ref, b2_ref, sel_ref,
                      fcw_ref, fb1_ref, fb2_ref, out_ref, xstk_ref, ystk_ref, *,
                      seg_off, z_off, seg_L2, half, k1, pad1, k2, cin, c1out, n_graphs):
    N1 = xp_ref.shape[1] - 2 * pad1           # packed conv1 lane width (96)
    internal = [o for o in seg_off if o > 0]  # internal segment boundaries (static ints)

    # ---- stage 1: build the K shifted copies in-kernel (shifted ref reads + masks),
    #      stack along sublanes in VMEM scratch, then ONE conv1 matmul for all segments.
    lane = jax.lax.broadcasted_iota(jnp.int32, (cin, N1), 1)
    for k in range(k1):
        d = k - pad1
        v = xp_ref[:, pl.ds(pad1 + d, N1)]    # column j reads packed col j + d (guard cols = 0)
        if d < 0:
            bad = [b + t for b in internal for t in range(-d)]      # would read previous segment
        elif d > 0:
            bad = [b - 1 - t for b in internal for t in range(d)]   # would read next segment
        else:
            bad = []
        if bad:
            m = lane == bad[0]
            for cc in bad[1:]:
                m = m | (lane == cc)
            v = jnp.where(m, 0.0, v)
        xstk_ref[k * cin:(k + 1) * cin, :] = v
    c1_all = jnp.dot(w1s_ref[...], xstk_ref[...],
                     preferred_element_type=jnp.float32) + b1_ref[...]          # (C1, N1)

    # ---- stage 2: single selector matmul (mp1 + conv2 shifts + mp2 folded), then
    #      pairwise mp1-max + relu on the VPU, stacked along sublanes for conv2.
    slab_w = 2 * half
    sel_out = jnp.dot(c1_all, sel_ref[...], preferred_element_type=jnp.float32)  # (C1, K2*2*slab_w)
    for k in range(k2):
        e = sel_out[:, (2 * k) * slab_w:(2 * k + 1) * slab_w]
        o = sel_out[:, (2 * k + 1) * slab_w:(2 * k + 2) * slab_w]
        ystk_ref[k * c1out:(k + 1) * c1out, :] = jnp.maximum(jnp.maximum(e, o), 0.0)

    # ---- stage 3: single conv2 matmul; maxpool2 = lane-half max on the VPU.
    acc = jnp.dot(w2f_ref[...], ystk_ref[...],
                  preferred_element_type=jnp.float32) + b2_ref[...]              # (C2, 2*half)
    z_all = jnp.maximum(acc[:, :half], acc[:, half:])                            # (C2, half)

    # ---- head: fc1/fc2 as elementwise mul + reductions, sigmoid, one dense store.
    prod = z_all * fcw_ref[...]
    colsum = jnp.sum(prod, axis=0, keepdims=True)                                # (1, half)
    fb1 = fb1_ref[...]
    fb2 = fb2_ref[...]
    lane_b = jax.lax.broadcasted_iota(jnp.int32, (1, n_graphs), 1)
    result = jnp.zeros((1, n_graphs), jnp.float32)
    for g in range(n_graphs):
        zo, zl = z_off[g], seg_L2[g]
        yo, yl = z_off[n_graphs + g], seg_L2[n_graphs + g]
        r1 = jnp.sum(colsum[:, zo:zo + zl], axis=1, keepdims=True) + fb1         # (1,1)
        r2 = jnp.sum(colsum[:, yo:yo + yl], axis=1, keepdims=True) + fb2         # (1,1)
        res = r1 * r2
        # TODO(synk): nn.Dropout(p=0.2) is identity in eval/inference mode; train-mode dropout omitted.
        sig = jnp.where(res >= 0.0,
                        1.0 / (1.0 + jnp.exp(-res)),
                        jnp.exp(res) / (1.0 + jnp.exp(res)))                     # safe sigmoid
        result = result + jnp.where(lane_b == g, 1.0, 0.0) * sig
    out_ref[...] = result                                                        # single (1, B) store


# ----------------------------- wrapper ----------------------------------------------
@jax.jit
def conv_forward(hidden, x, params):
    """Mirrors Conv.forward(hidden, x) -- single fused pallas_call."""
    w1, b1, w2, b2, fw1, fb1, fw2, fb2 = params
    Cin, C1, K1, pad1 = CONV1['in_channels'], CONV1['out_channels'], CONV1['kernel_size'], CONV1['padding']
    C2, K2 = CONV2['out_channels'], CONV2['kernel_size']

    concat = jnp.concatenate([hidden, x], axis=1).reshape(-1, Cin, CONCAT)   # (B, Cin, 32)
    hid = hidden.reshape(-1, Cin, HID_DIM)                                   # (B, Cin, 16)
    B = concat.shape[0]

    # pack all graphs & both branches along the lane axis: [Z_0..Z_{B-1} | Y_0..Y_{B-1}]
    seg_lens = [CONCAT] * B + [HID_DIM] * B
    z_pack = jnp.transpose(concat, (1, 0, 2)).reshape(Cin, B * CONCAT)
    y_pack = jnp.transpose(hid, (1, 0, 2)).reshape(Cin, B * HID_DIM)
    x_pack = jnp.pad(jnp.concatenate([z_pack, y_pack], axis=1),
                     ((0, 0), (pad1, pad1)))                                 # (Cin, N1 + 2*pad)
    N1 = int(sum(seg_lens))

    # weights reshaped to the packed layouts.
    w1s = jnp.transpose(w1, (0, 2, 1)).reshape(C1, K1 * Cin)                 # (C1, K*Cin), tap-major rows
    w2f = jnp.transpose(w2, (0, 2, 1)).reshape(C2, K2 * C1)                  # (C2, K*C1),  tap-major cols
    b1c = b1.reshape(C1, 1)
    b2c = b2.reshape(C2, 1)

    # fused pool/shift/pool selector (trace-time constant) + packing metadata.
    sel_big, seg_off, z_off, seg_L2, half = build_consts(seg_lens, CONV2, MP1, MP2)

    # guard against get_conv_mp_out_size's odd-length +1 rounding diverging from the real pooled length.
    Lz2, Ly2 = seg_L2[0], seg_L2[B]
    assert fw1.shape[0] == C2 * Lz2 and fw2.shape[0] == C2 * Ly2, \
        "fc weight size does not match pooled feature size (odd pooled length?)"

    fw1m = fw1.reshape(C2, Lz2)            # fc1 weight as (C2, L2): matches row-major flatten of Z
    fw2m = fw2.reshape(C2, Ly2)
    fcw_all = jnp.concatenate([fw1m] * B + [fw2m] * B, axis=1)               # (C2, half), segment order

    kernel = functools.partial(
        conv_fused_kernel,
        seg_off=tuple(seg_off), z_off=tuple(z_off), seg_L2=tuple(seg_L2), half=half,
        k1=K1, pad1=pad1, k2=K2, cin=Cin, c1out=C1, n_graphs=B)

    vmem = pl.BlockSpec(memory_space=pltpu.MemorySpace.VMEM)
    out = pl.pallas_call(
        kernel,
        out_shape=jax.ShapeDtypeStruct((1, B), jnp.float32),
        in_specs=[vmem] * 9,
        out_specs=vmem,
        scratch_shapes=[pltpu.VMEM((K1 * Cin, N1), jnp.float32),     # conv1 shift-stacked operand
                        pltpu.VMEM((K2 * C1, 2 * half), jnp.float32)],  # conv2 stacked operand
    )(x_pack, w1s, b1c, w2f, b2c, sel_big, fcw_all, fb1, fb2)
    return out.reshape(-1)            # torch.flatten


# ----------------------------- pure-JAX reference ------------------------------------
def _conv1d_ref(x, w, b, pad):
    out = jax.lax.conv_general_dilated(x, w, (1,), [(pad, pad)],
                                       dimension_numbers=('NCH', 'OIH', 'NCH'))
    return out + b[None, :, None]


def _maxpool1d_ref(x, kernel_size, stride):
    return jax.lax.reduce_window(x, -jnp.inf, jax.lax.max,
                                 (1, 1, kernel_size), (1, 1, stride), 'VALID')


def conv_forward_ref(hidden, x, params):
    w1, b1, w2, b2, fw1, fb1, fw2, fb2 = params
    concat = jnp.concatenate([hidden, x], axis=1).reshape(-1, CONV1['in_channels'], CONCAT)
    Z = _maxpool1d_ref(jax.nn.relu(_conv1d_ref(concat, w1, b1, CONV1['padding'])), **MP1)
    Z = _maxpool1d_ref(_conv1d_ref(Z, w2, b2, CONV2['padding']), **MP2)
    hid = hidden.reshape(-1, CONV1['in_channels'], HID_DIM)
    Y = _maxpool1d_ref(jax.nn.relu(_conv1d_ref(hid, w1, b1, CONV1['padding'])), **MP1)
    Y = _maxpool1d_ref(_conv1d_ref(Y, w2, b2, CONV2['padding']), **MP2)
    Zf = Z.reshape(Z.shape[0], -1)
    Yf = Y.reshape(Y.shape[0], -1)
    res = (Zf @ fw1 + fb1) * (Yf @ fw2 + fb2)
    return jax.nn.sigmoid(res.reshape(-1))


# ----------------------------- main ---------------------------------------------------
if __name__ == "__main__":
    key = jax.random.PRNGKey(0)
    ks = jax.random.split(key, 12)

    fc1_size = get_conv_mp_out_size(FC1_IN_LEN, CONV2, [MP1, MP2])   # = 64
    fc2_size = get_conv_mp_out_size(FC2_IN_LEN, CONV2, [MP1, MP2])   # = 32

    def uinit(k, shape, fan_in):
        a = 1.0 / np.sqrt(fan_in)
        return jax.random.uniform(k, shape, jnp.float32, minval=-a, maxval=a)

    # deterministic "synthetic checkpoint"
    w1 = uinit(ks[0], (CONV1['out_channels'], CONV1['in_channels'], CONV1['kernel_size']),
               CONV1['in_channels'] * CONV1['kernel_size'])
    b1 = uinit(ks[1], (CONV1['out_channels'],), CONV1['in_channels'] * CONV1['kernel_size'])
    w2 = uinit(ks[2], (CONV2['out_channels'], CONV2['in_channels'], CONV2['kernel_size']),
               CONV2['in_channels'] * CONV2['kernel_size'])
    b2 = uinit(ks[3], (CONV2['out_channels'],), CONV2['in_channels'] * CONV2['kernel_size'])
    fw1 = uinit(ks[4], (fc1_size, 1), fc1_size)          # = nn.Linear(fc1_size, 1).weight.T
    fb1 = uinit(ks[5], (1, 1), fc1_size)
    fw2 = uinit(ks[6], (fc2_size, 1), fc2_size)
    fb2 = uinit(ks[7], (1, 1), fc2_size)
    params = (w1, b1, w2, b2, fw1, fb1, fw2, fb2)

    # inputs: hidden (B*Cin, HID_DIM), x (B*Cin, X_DIM) -- as expected by forward()
    hidden = jax.random.normal(ks[8], (BATCH * IN_CH, HID_DIM), jnp.float32)
    x = jax.random.normal(ks[9], (BATCH * IN_CH, X_DIM), jnp.float32)

    out = conv_forward(hidden, x, params)
    out = jax.block_until_ready(out)

    ref = conv_forward_ref(hidden, x, params)
    ref = jax.block_until_ready(ref)

    if not np.allclose(np.asarray(out), np.asarray(ref), atol=1e-4, rtol=1e-4):
        raise AssertionError(f"mismatch: pallas={np.asarray(out)} ref={np.asarray(ref)}")
    assert out.shape == (BATCH,)
    print("KERNEL_OK")
</pallas_src>

<mosaic_0001>
module attributes {stable_mosaic.version = 11 : i64} {
  func.func @conv_fused_kernel(%arg0: memref<4x98xf32, #tpu.memory_space<vmem>>, %arg1: memref<8x12xf32, #tpu.memory_space<vmem>>, %arg2: memref<8x1xf32, #tpu.memory_space<vmem>>, %arg3: memref<8x24xf32, #tpu.memory_space<vmem>>, %arg4: memref<8x1xf32, #tpu.memory_space<vmem>>, %arg5: memref<96x288xf32, #tpu.memory_space<vmem>>, %arg6: memref<8x24xf32, #tpu.memory_space<vmem>>, %arg7: memref<1x1xf32, #tpu.memory_space<vmem>>, %arg8: memref<1x1xf32, #tpu.memory_space<vmem>>, %arg9: memref<1x2xf32, #tpu.memory_space<vmem>>, %arg10: memref<12x96xf32, #tpu.memory_space<vmem>>, %arg11: memref<24x48xf32, #tpu.memory_space<vmem>>) attributes {dimension_semantics = [], scalar_prefetch = 0 : i64, scratch_operands = 2 : i64, tpu.core_type = #tpu.core_type<tc>} {
    %0 = tpu.iota {dimensions = array<i32: 1>} : vector<4x96xi32>
    %c0 = arith.constant 0 : index
    %c0_0 = arith.constant 0 : index
    %1 = vector.load %arg0[%c0, %c0_0] : memref<4x98xf32, #tpu.memory_space<vmem>>, vector<4x96xf32>
    %c32_i32 = arith.constant 32 : i32
    %2 = vector.broadcast %c32_i32 : i32 to vector<4x96xi32>
    %3 = arith.cmpi eq, %0, %2 : vector<4x96xi32>
    %c64_i32 = arith.constant 64 : i32
    %4 = vector.broadcast %c64_i32 : i32 to vector<4x96xi32>
    %5 = arith.cmpi eq, %0, %4 : vector<4x96xi32>
    %6 = arith.ori %3, %5 : vector<4x96xi1>
    %c80_i32 = arith.constant 80 : i32
    %7 = vector.broadcast %c80_i32 : i32 to vector<4x96xi32>
    %8 = arith.cmpi eq, %0, %7 : vector<4x96xi32>
    %9 = arith.ori %6, %8 : vector<4x96xi1>
    %cst = arith.constant 0.000000e+00 : f32
    %10 = vector.broadcast %cst : f32 to vector<4x96xf32>
    %11 = arith.select %9, %10, %1 : vector<4x96xi1>, vector<4x96xf32>
    %c0_1 = arith.constant 0 : index
    %c0_2 = arith.constant 0 : index
    %12 = vector.load %arg10[%c0_1, %c0_2] : memref<12x96xf32, #tpu.memory_space<vmem>>, vector<4x96xf32>
    tpu.vector_store %arg10[%c0_1, %c0_2], %11 {strides = array<i32>} : memref<12x96xf32, #tpu.memory_space<vmem>>, vector<4x96xf32>,
    %c0_3 = arith.constant 0 : index
    %c1 = arith.constant 1 : index
    %13 = vector.load %arg0[%c0_3, %c1] : memref<4x98xf32, #tpu.memory_space<vmem>>, vector<4x96xf32>
    %c4 = arith.constant 4 : index
    %c0_4 = arith.constant 0 : index
    %14 = vector.load %arg10[%c4, %c0_4] : memref<12x96xf32, #tpu.memory_space<vmem>>, vector<4x96xf32>
    tpu.vector_store %arg10[%c4, %c0_4], %13 {strides = array<i32>} : memref<12x96xf32, #tpu.memory_space<vmem>>, vector<4x96xf32>,
    %c0_5 = arith.constant 0 : index
    %c2 = arith.constant 2 : index
    %15 = vector.load %arg0[%c0_5, %c2] : memref<4x98xf32, #tpu.memory_space<vmem>>, vector<4x96xf32>
    %c31_i32 = arith.constant 31 : i32
    %16 = vector.broadcast %c31_i32 : i32 to vector<4x96xi32>
    %17 = arith.cmpi eq, %0, %16 : vector<4x96xi32>
    %c63_i32 = arith.constant 63 : i32
    %18 = vector.broadcast %c63_i32 : i32 to vector<4x96xi32>
    %19 = arith.cmpi eq, %0, %18 : vector<4x96xi32>
    %20 = arith.ori %17, %19 : vector<4x96xi1>
    %c79_i32 = arith.constant 79 : i32
    %21 = vector.broadcast %c79_i32 : i32 to vector<4x96xi32>
    %22 = arith.cmpi eq, %0, %21 : vector<4x96xi32>
    %23 = arith.ori %20, %22 : vector<4x96xi1>
    %cst_6 = arith.constant 0.000000e+00 : f32
    %24 = vector.broadcast %cst_6 : f32 to vector<4x96xf32>
    %25 = arith.select %23, %24, %15 : vector<4x96xi1>, vector<4x96xf32>
    %c8 = arith.constant 8 : index
    %c0_7 = arith.constant 0 : index
    %26 = vector.load %arg10[%c8, %c0_7] : memref<12x96xf32, #tpu.memory_space<vmem>>, vector<4x96xf32>
    tpu.vector_store %arg10[%c8, %c0_7], %25 {strides = array<i32>} : memref<12x96xf32, #tpu.memory_space<vmem>>, vector<4x96xf32>,
    %c0_8 = arith.constant 0 : index
    %c0_9 = arith.constant 0 : index
    %27 = vector.load %arg1[%c0_8, %c0_9] : memref<8x12xf32, #tpu.memory_space<vmem>>, vector<8x12xf32>
    %c0_10 = arith.constant 0 : index
    %c0_11 = arith.constant 0 : index
    %28 = vector.load %arg10[%c0_10, %c0_11] : memref<12x96xf32, #tpu.memory_space<vmem>>, vector<12x96xf32>
    %cst_12 = arith.constant dense<0.000000e+00> : vector<8x96xf32>
    %29 = tpu.matmul %27, %28, %cst_12 {dimension_numbers = #tpu.dot_dimension_numbers<[1], [0], [0], [1], [0, 0, 1, 1], [], []>} : vector<8x12xf32>, vector<12x96xf32>, vector<8x96xf32> -> vector<8x96xf32>
    %c0_13 = arith.constant 0 : index
    %c0_14 = arith.constant 0 : index
    %30 = vector.load %arg2[%c0_13, %c0_14] : memref<8x1xf32, #tpu.memory_space<vmem>>, vector<8x1xf32>
    %31 = vector.broadcast %30 : vector<8x1xf32> to vector<8x96xf32>
    %32 = arith.addf %29, %31 : vector<8x96xf32>
    %c0_15 = arith.constant 0 : index
    %c0_16 = arith.constant 0 : index
    %33 = vector.load %arg5[%c0_15, %c0_16] : memref<96x288xf32, #tpu.memory_space<vmem>>, vector<96x288xf32>
    %cst_17 = arith.constant dense<0.000000e+00> : vector<8x288xf32>
    %34 = tpu.matmul %32, %33, %cst_17 {dimension_numbers = #tpu.dot_dimension_numbers<[1], [0], [0], [1], [0, 0, 1, 1], [], []>} : vector<8x96xf32>, vector<96x288xf32>, vector<8x288xf32> -> vector<8x288xf32>
    %35 = vector.extract_strided_slice %34 {offsets = [0, 0], sizes = [8, 48], strides = [1, 1]} : vector<8x288xf32> to vector<8x48xf32>
    %36 = vector.extract_strided_slice %34 {offsets = [0, 48], sizes = [8, 48], strides = [1, 1]} : vector<8x288xf32> to vector<8x48xf32>
    %37 = arith.maximumf %35, %36 : vector<8x48xf32>
    %cst_18 = arith.constant 0.000000e+00 : f32
    %38 = vector.broadcast %cst_18 : f32 to vector<8x48xf32>
    %39 = arith.maximumf %37, %38 : vector<8x48xf32>
    %c0_19 = arith.constant 0 : index
    %c0_20 = arith.constant 0 : index
    %40 = vector.load %arg11[%c0_19, %c0_20] : memref<24x48xf32, #tpu.memory_space<vmem>>, vector<8x48xf32>
    tpu.vector_store %arg11[%c0_19, %c0_20], %39 {strides = array<i32>} : memref<24x48xf32, #tpu.memory_space<vmem>>, vector<8x48xf32>,
    %41 = vector.extract_strided_slice %34 {offsets = [0, 96], sizes = [8, 48], strides = [1, 1]} : vector<8x288xf32> to vector<8x48xf32>
    %42 = vector.extract_strided_slice %34 {offsets = [0, 144], sizes = [8, 48], strides = [1, 1]} : vector<8x288xf32> to vector<8x48xf32>
    %43 = arith.maximumf %41, %42 : vector<8x48xf32>
    %cst_21 = arith.constant 0.000000e+00 : f32
    %44 = vector.broadcast %cst_21 : f32 to vector<8x48xf32>
    %45 = arith.maximumf %43, %44 : vector<8x48xf32>
    %c8_22 = arith.constant 8 : index
    %c0_23 = arith.constant 0 : index
    %46 = vector.load %arg11[%c8_22, %c0_23] : memref<24x48xf32, #tpu.memory_space<vmem>>, vector<8x48xf32>
    tpu.vector_store %arg11[%c8_22, %c0_23], %45 {strides = array<i32>} : memref<24x48xf32, #tpu.memory_space<vmem>>, vector<8x48xf32>,
    %47 = vector.extract_strided_slice %34 {offsets = [0, 192], sizes = [8, 48], strides = [1, 1]} : vector<8x288xf32> to vector<8x48xf32>
    %48 = vector.extract_strided_slice %34 {offsets = [0, 240], sizes = [8, 48], strides = [1, 1]} : vector<8x288xf32> to vector<8x48xf32>
    %49 = arith.maximumf %47, %48 : vector<8x48xf32>
    %cst_24 = arith.constant 0.000000e+00 : f32
    %50 = vector.broadcast %cst_24 : f32 to vector<8x48xf32>
    %51 = arith.maximumf %49, %50 : vector<8x48xf32>
    %c16 = arith.constant 16 : index
    %c0_25 = arith.constant 0 : index
    %52 = vector.load %arg11[%c16, %c0_25] : memref<24x48xf32, #tpu.memory_space<vmem>>, vector<8x48xf32>
    tpu.vector_store %arg11[%c16, %c0_25], %51 {strides = array<i32>} : memref<24x48xf32, #tpu.memory_space<vmem>>, vector<8x48xf32>,
    %c0_26 = arith.constant 0 : index
    %c0_27 = arith.constant 0 : index
    %53 = vector.load %arg3[%c0_26, %c0_27] : memref<8x24xf32, #tpu.memory_space<vmem>>, vector<8x24xf32>
    %c0_28 = arith.constant 0 : index
    %c0_29 = arith.constant 0 : index
    %54 = vector.load %arg11[%c0_28, %c0_29] : memref<24x48xf32, #tpu.memory_space<vmem>>, vector<24x48xf32>
    %cst_30 = arith.constant dense<0.000000e+00> : vector<8x48xf32>
    %55 = tpu.matmul %53, %54, %cst_30 {dimension_numbers = #tpu.dot_dimension_numbers<[1], [0], [0], [1], [0, 0, 1, 1], [], []>} : vector<8x24xf32>, vector<24x48xf32>, vector<8x48xf32> -> vector<8x48xf32>
    %c0_31 = arith.constant 0 : index
    %c0_32 = arith.constant 0 : index
    %56 = vector.load %arg4[%c0_31, %c0_32] : memref<8x1xf32, #tpu.memory_space<vmem>>, vector<8x1xf32>
    %57 = vector.broadcast %56 : vector<8x1xf32> to vector<8x48xf32>
    %58 = arith.addf %55, %57 : vector<8x48xf32>
    %59 = vector.extract_strided_slice %58 {offsets = [0, 0], sizes = [8, 24], strides = [1, 1]} : vector<8x48xf32> to vector<8x24xf32>
    %60 = vector.extract_strided_slice %58 {offsets = [0, 24], sizes = [8, 24], strides = [1, 1]} : vector<8x48xf32> to vector<8x24xf32>
    %61 = arith.maximumf %59, %60 : vector<8x24xf32>
    %c0_33 = arith.constant 0 : index
    %c0_34 = arith.constant 0 : index
    %62 = vector.load %arg6[%c0_33, %c0_34] : memref<8x24xf32, #tpu.memory_space<vmem>>, vector<8x24xf32>
    %63 = arith.mulf %61, %62 : vector<8x24xf32>
    %cst_35 = arith.constant dense<0.000000e+00> : vector<24xf32>
    %64 = vector.multi_reduction <add>, %63, %cst_35 [0] : vector<8x24xf32> to vector<24xf32>
    %65 = vector.shape_cast %64 : vector<24xf32> to vector<1x24xf32>
    %c0_36 = arith.constant 0 : index
    %c0_37 = arith.constant 0 : index
    %66 = vector.load %arg7[%c0_36, %c0_37] : memref<1x1xf32, #tpu.memory_space<vmem>>, vector<1x1xf32>
    %c0_38 = arith.constant 0 : index
    %c0_39 = arith.constant 0 : index
    %67 = vector.load %arg8[%c0_38, %c0_39] : memref<1x1xf32, #tpu.memory_space<vmem>>, vector<1x1xf32>
    %68 = tpu.iota {dimensions = array<i32: 1>} : vector<1x2xi32>
    %cst_40 = arith.constant 0.000000e+00 : f32
    %69 = vector.broadcast %cst_40 : f32 to vector<1x2xf32>
    %70 = vector.extract_strided_slice %65 {offsets = [0, 0], sizes = [1, 8], strides = [1, 1]} : vector<1x24xf32> to vector<1x8xf32>
    %cst_41 = arith.constant dense<0.000000e+00> : vector<1xf32>
    %71 = vector.multi_reduction <add>, %70, %cst_41 [1] : vector<1x8xf32> to vector<1xf32>
    %72 = vector.shape_cast %71 : vector<1xf32> to vector<1x1xf32>
    %73 = arith.addf %72, %66 : vector<1x1xf32>
    %74 = vector.extract_strided_slice %65 {offsets = [0, 16], sizes = [1, 4], strides = [1, 1]} : vector<1x24xf32> to vector<1x4xf32>
    %cst_42 = arith.constant dense<0.000000e+00> : vector<1xf32>
    %75 = vector.multi_reduction <add>, %74, %cst_42 [1] : vector<1x4xf32> to vector<1xf32>
    %76 = vector.shape_cast %75 : vector<1xf32> to vector<1x1xf32>
    %77 = arith.addf %76, %67 : vector<1x1xf32>
    %78 = arith.mulf %73, %77 : vector<1x1xf32>
    %cst_43 = arith.constant 0.000000e+00 : f32
    %79 = vector.broadcast %cst_43 : f32 to vector<1x1xf32>
    %80 = arith.cmpf oge, %78, %79 : vector<1x1xf32>
    %cst_44 = arith.constant 0.000000e+00 : f32
    %81 = vector.broadcast %cst_44 : f32 to vector<1x1xf32>
    %82 = arith.subf %81, %78 : vector<1x1xf32>
    %83 = math.exp %82 : vector<1x1xf32>
    %cst_45 = arith.constant 1.000000e+00 : f32
    %84 = vector.broadcast %cst_45 : f32 to vector<1x1xf32>
    %85 = arith.addf %84, %83 : vector<1x1xf32>
    %cst_46 = arith.constant 1.000000e+00 : f32
    %86 = vector.broadcast %cst_46 : f32 to vector<1x1xf32>
    %87 = arith.divf %86, %85 : vector<1x1xf32>
    %88 = math.exp %78 : vector<1x1xf32>
    %89 = math.exp %78 : vector<1x1xf32>
    %cst_47 = arith.constant 1.000000e+00 : f32
    %90 = vector.broadcast %cst_47 : f32 to vector<1x1xf32>
    %91 = arith.addf %90, %89 : vector<1x1xf32>
    %92 = arith.divf %88, %91 : vector<1x1xf32>
    %93 = arith.select %80, %87, %92 : vector<1x1xi1>, vector<1x1xf32>
    %c0_i32 = arith.constant 0 : i32
    %94 = vector.broadcast %c0_i32 : i32 to vector<1x2xi32>
    %95 = arith.cmpi eq, %68, %94 : vector<1x2xi32>
    %cst_48 = arith.constant 1.000000e+00 : f32
    %cst_49 = arith.constant 0.000000e+00 : f32
    %96 = vector.broadcast %cst_48 : f32 to vector<1x2xf32>
    %97 = vector.broadcast %cst_49 : f32 to vector<1x2xf32>
    %98 = arith.select %95, %96, %97 : vector<1x2xi1>, vector<1x2xf32>
    %99 = vector.broadcast %93 : vector<1x1xf32> to vector<1x2xf32>
    %100 = arith.mulf %98, %99 : vector<1x2xf32>
    %101 = arith.addf %69, %100 : vector<1x2xf32>
    %102 = vector.extract_strided_slice %65 {offsets = [0, 8], sizes = [1, 8], strides = [1, 1]} : vector<1x24xf32> to vector<1x8xf32>
    %cst_50 = arith.constant dense<0.000000e+00> : vector<1xf32>
    %103 = vector.multi_reduction <add>, %102, %cst_50 [1] : vector<1x8xf32> to vector<1xf32>
    %104 = vector.shape_cast %103 : vector<1xf32> to vector<1x1xf32>
    %105 = arith.addf %104, %66 : vector<1x1xf32>
    %106 = vector.extract_strided_slice %65 {offsets = [0, 20], sizes = [1, 4], strides = [1, 1]} : vector<1x24xf32> to vector<1x4xf32>
    %cst_51 = arith.constant dense<0.000000e+00> : vector<1xf32>
    %107 = vector.multi_reduction <add>, %106, %cst_51 [1] : vector<1x4xf32> to vector<1xf32>
    %108 = vector.shape_cast %107 : vector<1xf32> to vector<1x1xf32>
    %109 = arith.addf %108, %67 : vector<1x1xf32>
    %110 = arith.mulf %105, %109 : vector<1x1xf32>
    %cst_52 = arith.constant 0.000000e+00 : f32
    %111 = vector.broadcast %cst_52 : f32 to vector<1x1xf32>
    %112 = arith.cmpf oge, %110, %111 : vector<1x1xf32>
    %cst_53 = arith.constant 0.000000e+00 : f32
    %113 = vector.broadcast %cst_53 : f32 to vector<1x1xf32>
    %114 = arith.subf %113, %110 : vector<1x1xf32>
    %115 = math.exp %114 : vector<1x1xf32>
    %cst_54 = arith.constant 1.000000e+00 : f32
    %116 = vector.broadcast %cst_54 : f32 to vector<1x1xf32>
    %117 = arith.addf %116, %115 : vector<1x1xf32>
    %cst_55 = arith.constant 1.000000e+00 : f32
    %118 = vector.broadcast %cst_55 : f32 to vector<1x1xf32>
    %119 = arith.divf %118, %117 : vector<1x1xf32>
    %120 = math.exp %110 : vector<1x1xf32>
    %121 = math.exp %110 : vector<1x1xf32>
    %cst_56 = arith.constant 1.000000e+00 : f32
    %122 = vector.broadcast %cst_56 : f32 to vector<1x1xf32>
    %123 = arith.addf %122, %121 : vector<1x1xf32>
    %124 = arith.divf %120, %123 : vector<1x1xf32>
    %125 = arith.select %112, %119, %124 : vector<1x1xi1>, vector<1x1xf32>
    %c1_i32 = arith.constant 1 : i32
    %126 = vector.broadcast %c1_i32 : i32 to vector<1x2xi32>
    %127 = arith.cmpi eq, %68, %126 : vector<1x2xi32>
    %cst_57 = arith.constant 1.000000e+00 : f32
    %cst_58 = arith.constant 0.000000e+00 : f32
    %128 = vector.broadcast %cst_57 : f32 to vector<1x2xf32>
    %129 = vector.broadcast %cst_58 : f32 to vector<1x2xf32>
    %130 = arith.select %127, %128, %129 : vector<1x2xi1>, vector<1x2xf32>
    %131 = vector.broadcast %125 : vector<1x1xf32> to vector<1x2xf32>
    %132 = arith.mulf %130, %131 : vector<1x2xf32>
    %133 = arith.addf %101, %132 : vector<1x2xf32>
    %c0_59 = arith.constant 0 : index
    %c0_60 = arith.constant 0 : index
    %134 = vector.load %arg9[%c0_59, %c0_60] : memref<1x2xf32, #tpu.memory_space<vmem>>, vector<1x2xf32>
    tpu.vector_store %arg9[%c0_59, %c0_60], %133 {strides = array<i32>} : memref<1x2xf32, #tpu.memory_space<vmem>>, vector<1x2xf32>,
    return
  }
}

</mosaic_0001>

<bundles_post_ra>
// kernel: conv_forward.1
= control target key start
LH: loop header
LB: loop body
LE: loop exit
PB: predicated region body
PF: predicated region fallthrough
CT: control target
= control target key end

     0   :  { %s669_s0 = inlined_call_operand.vmem [shape: f32[4,98], index: 0, kind: input, shape index: {}]   ;;  %s670_s1 = inlined_call_operand.vmem [shape: f32[8,12], index: 1, kind: input, shape index: {}]   ;;  %s671_s2 = inlined_call_operand.vmem [shape: f32[8,1], index: 2, kind: input, shape index: {}]   ;;  %s672_s3 = inlined_call_operand.vmem [shape: f32[8,24], index: 3, kind: input, shape index: {}]   ;;  %s673_s4 = inlined_call_operand.vmem [shape: f32[8,1], index: 4, kind: input, shape index: {}]   ;;  %s674_s5 = inlined_call_operand.hbm [shape: f32[96,288], index: 5, kind: input, shape index: {}]   ;;  %s675_s6 = inlined_call_operand.vmem [shape: f32[8,24], index: 6, kind: input, shape index: {}]   ;;  %s676_s7 = inlined_call_operand.<no memory space> [shape: f32[1,1], index: 7, kind: input, shape index: {}]   ;;  %s677_s9 = inlined_call_operand.hbm [shape: f32[1,2], index: 9, kind: output, shape index: {}]   ;;  %s678_s8 = inlined_call_operand.<no memory space> [shape: f32[1,1], index: 8, kind: input, shape index: {}]  }
   0x1   :  { %v14_v0 = vstv %s676_s7  ;;  %v16_v1 = vstv %s678_s8 }
   0x2   :  { %15 = vst [vmem:[#allocation4] sm:$0x1] %v14_v0 }
   0x3   :  { %17 = vst [vmem:[#allocation5] sm:$0x1] %v16_v1 }
   0x4   :  { %18 = vsyncpa [#allocation7], 0 }
   0x5   :  { %19 = vsyncpa [#allocation8], 0  ;;  %s34_s15 = sshll.u32 %s674_s5, 4  ;;  %s546_s16 = smov [#allocation6]   ;;  %s35_s15 = int_to_ptr.hbm [resolvable:$true] %s34_s15 }
   0x6   :  { %s36_s17 = sshll.u32 %s546_s16, 4  ;;  %s547_s18 = smov 384   ;;  %s37_s17 = int_to_ptr.vmem [resolvable:$true] %s36_s17 }
   0x7   :  { %s548_s19 = smov 24  }
   0x8   :  { %42 = dma.hbm_to_vmem [thread:$0]  %s35_s15, 4608, %s37_s17, [#allocation7], %s547_s18, %s547_s18, %s548_s19  }
   0x9   :  { %542 = dma.done.wait [#allocation7], 4608  }
   0xa   :  { %543 = vsyncadd [#allocation7], 4294962688  ;;  %v70_v2 = vld [vmem:[%s669_s0] sm:$0xf]  ;;  %s549_s8 = smov 126   ;;  %s550_s5 = smov 127   ;;  %v53_v4 = vlaneseq }
   0xb   :  { %77 = vrot.lane.b32.xlu0 %v70_v2, %s549_s8  ;;  %v64_v3 = vld [vmem:[%s669_s0] sm:$0xf]  ;;  %vm62_vm5 = vcmask 781312   ;;  %v152_v9 = vld [vmem:[#allocation6 + $0x108] sm:$0xff]  ;;  %v551_v11 = vmov 0   ;;  %v151_v15 = vld [vmem:[#allocation6 + $0x100] sm:$0xff] }
   0xc   :  { %v626_v5 = vand.u32 127, %v53_v4  ;;  %v55_v6 = vld [vmem:[%s669_s0] sm:$0xf]  ;;  %476 = vset.pattern.permute.xlu1 %v551_v11  ;;  %163 = vmatpush.msra.mxu1 %v152_v9  ;;  %v147_v17 = vld [vmem:[#allocation6 + $0xe0] sm:$0xff]  ;;  %v148_v18 = vld [vmem:[#allocation6 + $0xe8] sm:$0xff]  ;;  %vm95_vm11 = vcmask 1043456  }
   0xd   :  { %v85_v8 = vld [vmem:[%s671_s2] sm:$0xff]  ;;  %v143_v19 = vld [vmem:[#allocation6 + $0xc0] sm:$0xff]  ;;  %477 = vset.pattern.permute.xlu0 %v551_v11  ;;  %v144_v20 = vld [vmem:[#allocation6 + $0xc8] sm:$0xff]  ;;  %vm91_vm12 = vcmask 97280   ;;  %vm155_vm13 = vcmask 785408   ;;  %vm225_vm14 = vcmask 392192  }
   0xe   :  { %vm56_vm0 = vcmp.eq.s32.totalorder %v626_v5, 32  ;;  %vm57_vm1 = vcmp.eq.s32.totalorder %v626_v5, 64  ;;  %vm59_vm3 = vcmp.eq.s32.totalorder %v626_v5, 80  ;;  %v153_v10 = vld [vmem:[#allocation6 + $0x110] sm:$0xff]  ;;  %v154_v12 = vld [vmem:[#allocation6 + $0x118] sm:$0xff]  ;;  %88 = vperm.xlu1 %476, %v85_v8   ;;  %vm71_vm6 = vcmp.eq.s32.totalorder %v626_v5, 31 }
   0xf   :  { %vm58_vm2 = vmor %vm56_vm0, %vm57_vm1  ;;  %v149_v13 = vld [vmem:[#allocation6 + $0xf0] sm:$0xff]  ;;  %v150_v14 = vld [vmem:[#allocation6 + $0xf8] sm:$0xff]  ;;  %183 = vmatpush.msra.mxu2 %v153_v10  ;;  %203 = vmatpush.msra.mxu3 %v154_v12  ;;  %vm72_vm7 = vcmp.eq.s32.totalorder %v626_v5, 63  ;;  %vm74_vm9 = vcmp.eq.s32.totalorder %v626_v5, 79  ;;  %vm248_vm15 = vcmask 654336   ;;  %s553_s27 = smov 32  }
  0x10   :  { %vm60_vm4 = vmor %vm58_vm2, %vm59_vm3  ;;  %v146_v16 = vld [vmem:[#allocation6 + $0xd8] sm:$0xff]  ;;  %164 = vmatpush.msra.mxu1 %v149_v13  ;;  %v145_v21 = vld [vmem:[#allocation6 + $0xd0] sm:$0xff]  ;;  %s554_s28 = smov 64   ;;  %vm241_vm0 = vcmask 261120   ;;  %vm268_vm1 = vcmask 195584   ;;  %vm308_vm2 = vcmask 64512  }
  0x11   :  { %v61_v7 = vsel %vm60_vm4, 0.0, %v55_v6  ;;  %184 = vmatpush.msra.mxu2 %v150_v14  ;;  %204 = vmatpush.msra.mxu3 %v151_v15  ;;  %v140_v22 = vld [vmem:[#allocation6 + $0xa8] sm:$0xff]  ;;  %v141_v23 = vld [vmem:[#allocation6 + $0xb0] sm:$0xff]  ;;  %v142_v24 = vld [vmem:[#allocation6 + $0xb8] sm:$0xff]  ;;  %s557_s14 = smov 112   ;;  %s558_s15 = smov 108  }
  0x12   :  { %63 = vst.msk [vmem:[#allocation2] sm:$0xf] %vm62_vm5, %v61_v7  ;;  %165 = vmatpush.msra.mxu1 %v146_v16  ;;  %v137_v25 = vld [vmem:[#allocation6 + $0x90] sm:$0xff]  ;;  %vm73_vm8 = vmor %vm71_vm6, %vm72_vm7  ;;  %v138_v26 = vld [vmem:[#allocation6 + $0x98] sm:$0xff]  ;;  %vm317_vm3 = vcmask 31744   ;;  %s445_s19 = sshll.u32 %s677_s9, 4  ;;  %s446_s19 = int_to_ptr.hbm [resolvable:$true] %s445_s19 }
  0x13   :  { %66 = vrot.lane.b32.xlu0 %v64_v3, %s550_s5  ;;  %185 = vmatpush.msra.mxu2 %v147_v17  ;;  %v139_v27 = vld [vmem:[#allocation6 + $0xa0] sm:$0xff]  ;;  %v134_v28 = vld [vmem:[#allocation6 + $0x78] sm:$0xff]  ;;  %vm641_vm10 = vmor %vm73_vm8, %vm74_vm9 }
  0x14   :  { %205 = vmatpush.msra.mxu3 %v148_v18  ;;  %166 = vmatpush.msra.mxu1 %v143_v19  ;;  %v135_v29 = vld [vmem:[#allocation6 + $0x80] sm:$0xff]  ;;  %v136_v31 = vld [vmem:[#allocation6 + $0x88] sm:$0xff]  ;;  %v133_v35 = vld [vmem:[#allocation6 + $0x70] sm:$0xff] }
  0x15   :  { %186 = vmatpush.msra.mxu2 %v144_v20  ;;  %v131_v32 = vld [vmem:[#allocation6 + $0x60] sm:$0xff]  ;;  %v132_v33 = vld [vmem:[#allocation6 + $0x68] sm:$0xff]  ;;  %v129_v38 = vld [vmem:[#allocation6 + $0x50] sm:$0xff] }
  0x16   :  { %206 = vmatpush.msra.mxu3 %v145_v21  ;;  %167 = vmatpush.msra.mxu1 %v140_v22  ;;  %v128_v36 = vld [vmem:[#allocation6 + $0x48] sm:$0xff]  ;;  %v130_v39 = vld [vmem:[#allocation6 + $0x58] sm:$0xff]  ;;  %v125_v40 = vld [vmem:[#allocation6 + $0x30] sm:$0xff] }
  0x17   :  { %187 = vmatpush.msra.mxu2 %v141_v23  ;;  %v126_v41 = vld [vmem:[#allocation6 + $0x38] sm:$0xff]  ;;  %v127_v42 = vld [vmem:[#allocation6 + $0x40] sm:$0xff]  ;;  %v124_v45 = vld [vmem:[#allocation6 + $0x28] sm:$0xff] }
  0x18   :  { %207 = vmatpush.msra.mxu3 %v142_v24  ;;  %168 = vmatpush.msra.mxu1 %v137_v25  ;;  %v122_v43 = vld [vmem:[#allocation6 + $0x18] sm:$0xff]  ;;  %v123_v44 = vld [vmem:[#allocation6 + $0x20] sm:$0xff]  ;;  %v120_v51 = vld [vmem:[#allocation6 + $0x8] sm:$0xff] }
  0x19   :  { %188 = vmatpush.msra.mxu2 %v138_v26  ;;  %v82_v48 = vld [vmem:[%s670_s1] sm:$0xff]  ;;  %v119_v50 = vld [vmem:[#allocation6] sm:$0xff]  ;;  %s552_s1 = smov 80  }
  0x1a   :  { %208 = vmatpush.msra.mxu3 %v139_v27  ;;  %169 = vmatpush.msra.mxu1 %v134_v28  ;;  %v121_v52 = vld [vmem:[#allocation6 + $0x10] sm:$0xff] }
  0x1b   :  { %189 = vmatpush.msra.mxu2 %v135_v29  ;;  %v262_v8 = vld [vmem:[%s673_s4] sm:$0xff]  ;;  %s555_s4 = smov 104  }
  0x1c   :  { %209 = vmatpush.msra.mxu3 %v136_v31  ;;  %170 = vmatpush.msra.mxu1 %v131_v32  ;;  %v258_v15 = vld [vmem:[%s672_s3] sm:$0xff]  ;;  %s556_s3 = smov 120  }
  0x1d   :  { %190 = vmatpush.msra.mxu2 %v132_v33  ;;  %v297_v20 = vld [vmem:[%s675_s6] sm:$0xff]  ;;  %s560_s6 = smov [#allocation9]  }
  0x1e   :  { %210 = vmatpush.msra.mxu3 %v133_v35  ;;  %171 = vmatpush.msra.mxu1 %v128_v36  ;;  %s443_s16 = sshll.u32 %s560_s6, 4  ;;  %s444_s16 = int_to_ptr.vmem [resolvable:$true] %s443_s16 }
  0x1f   :  { %191 = vmatpush.msra.mxu2 %v129_v38  ;;  %v306_v38 = vld [vmem:[#allocation4] sm:$0x1] }
  0x20   :  { %211 = vmatpush.msra.mxu3 %v130_v39  ;;  %172 = vmatpush.msra.mxu1 %v125_v40  ;;  %v307_v40 = vld [vmem:[#allocation5] sm:$0x1] }
  0x21   :  { %192 = vmatpush.msra.mxu2 %v126_v41 }
  0x22   :  { %212 = vmatpush.msra.mxu3 %v127_v42  ;;  %173 = vmatpush.msra.mxu1 %v122_v43 }
  0x23   :  { %193 = vmatpush.msra.mxu2 %v123_v44 }
  0x24   :  { %213 = vmatpush.msra.mxu3 %v124_v45  ;;  %174 = vmatpush.msra.mxu1 %v119_v50 }
  0x25   :  { %194 = vmatpush.msra.mxu2 %v120_v51 }
  0x26   :  { %214 = vmatpush.msra.mxu3 %v121_v52 }
  0x7d   :  { %v78_v34 = vpop.permute.xlu0 %77 }
  0x7e   :  { %v80_v37 = vsel %vm641_vm10, 0.0, %v78_v34 }
  0x7f   :  { %81 = vst.msk [vmem:[#allocation2 + $0x8] sm:$0xf] %vm62_vm5, %v80_v37 }
  0x80   :  { %v89_v53 = vpop.permute.xlu1 %88 }
  0x85   :  { %v67_v46 = vpop.permute.xlu0 %66 }
  0x86   :  { %69 = vst.msk [vmem:[#allocation2 + $0x4] sm:$0xf] %vm62_vm5, %v67_v46  ;;  %v84_v47 = vld [vmem:[#allocation2 + $0x8] sm:$0xf] }
  0x87   :  { %455 = vmatpush.msk.msra.mxu0 %vm95_vm11, %v84_v47 }
  0x8d   :  { %v83_v49 = vld [vmem:[#allocation2] sm:$0xff] }
  0x8e   :  { %114 = vmatpush.msra.mxu0 %v83_v49 }
  0x8f   :  { %456 = vmatmul.msk.f32.vlgmr.msra.gmra.mxu0 %vm91_vm12, %v82_v48 }
 0x10c   :  { %v116_v54 = vpop.f32.mrf.mxu0 }
 0x10d   :  { %v117_v55 = vadd.f32 %v116_v54, %v89_v53 }
 0x10f   :  { %457 = vmatmul.msk.f32.vlgmr.msra.gmra.mxu1 %vm155_vm13, %v117_v55  ;;  %458 = vmatmul.msk.f32.vlgmr.msra.gmra.mxu2 %vm155_vm13, %v117_v55 }
 0x110   :  { %459 = vmatmul.msk.f32.vlgmr.msra.gmra.mxu3 %vm155_vm13, %v117_v55 }
 0x18c   :  { %v176_v58 = vpop.f32.mrf.mxu1 }
 0x192   :  { %v196_v56 = vpop.f32.mrf.mxu2 }
 0x193   :  { %v216_v57 = vpop.f32.mrf.mxu3  ;;  %228 = vrot.lane.b32.xlu1 %v196_v56, %s552_s1 }
 0x194   :  { %246 = vrot.lane.b32.xlu2 %v216_v57, %s552_s1 }
 0x19c   :  { %220 = vrot.lane.b32.xlu2 %v176_v58, %s552_s1 }
 0x1ee   :  { %v247_v59 = vpop.permute.xlu2 %246 }
 0x1f6   :  { %v221_v60 = vpop.permute.xlu2 %220 }
 0x1f7   :  { %v223_v61 = vmax.f32 %v176_v58, %v221_v60 }
 0x1f9   :  { %v224_v62 = vmax.f32 %v223_v61, 0.0 }
 0x1fb   :  { %226 = vst.msk [vmem:[#allocation3] sm:$0xff] %vm225_vm14, %v224_v62 }
 0x202   :  { %v259_v16 = vld [vmem:[#allocation3] sm:$0xff] }
 0x205   :  { %v229_v63 = vpop.permute.xlu1 %228 }
 0x206   :  { %v231_v0 = vmax.f32 %v176_v58, %v229_v63  ;;  %v232_v1 = vmax.f32 %v196_v56, %v229_v63  ;;  %v249_v2 = vsel %vm248_vm15, %v229_v63, %v247_v59 }
 0x207   :  { %v251_v3 = vmax.f32 %v196_v56, %v249_v2 }
 0x208   :  { %v234_v4 = vmax.f32 %v232_v1, 0.0  ;;  %v233_v6 = vmax.f32 %v231_v0, 0.0 }
 0x209   :  { %v252_v7 = vmax.f32 %v251_v3, 0.0 }
 0x20a   :  { %239 = vrot.lane.b32.xlu2 %v234_v4, %s553_s27  ;;  %237 = vrot.lane.b32.xlu1 %v233_v6, %s553_s27 }
 0x20b   :  { %254 = vrot.lane.b32.xlu0 %v252_v7, %s554_s28 }
 0x213   :  { %265 = vperm.xlu0 %477, %v262_v8  }
 0x264   :  { %v240_v9 = vpop.permute.xlu2 %239 }
 0x27c   :  { %v238_v10 = vpop.permute.xlu1 %237 }
 0x27d   :  { %v242_v11 = vsel %vm241_vm0, %v238_v10, %v240_v9  ;;  %v255_v12 = vpop.permute.xlu0 %254 }
 0x27e   :  { %244 = vst.msk [vmem:[#allocation3 + $0x8] sm:$0xff] %vm225_vm14, %v242_v11 }
 0x27f   :  { %257 = vst.msk [vmem:[#allocation3 + $0x10] sm:$0xff] %vm225_vm14, %v255_v12 }
 0x285   :  { %v260_v14 = vld [vmem:[#allocation3 + $0x8] sm:$0xff]  ;;  %v266_v17 = vpop.permute.xlu0 %265 }
 0x286   :  { %v261_v13 = vld [vmem:[#allocation3 + $0x10] sm:$0xff] }
 0x287   :  { %285 = vmatpush.msrb.mxu0 %v261_v13 }
 0x289   :  { %286 = vmatpush.msrb.mxu0 %v260_v14 }
 0x28b   :  { %287 = vmatpush.msrb.mxu0 %v259_v16 }
 0x28c   :  { %460 = vmatmul.msk.f32.vlgmr.msrb.gmra.mxu0 %vm268_vm1, %v258_v15 }
 0x309   :  { %v289_v18 = vpop.f32.mrf.mxu0 }
 0x30a   :  { %v290_v19 = vadd.f32 %v289_v18, %v266_v17 }
 0x30c   :  { %293 = vrot.lane.b32.xlu1 %v290_v19, %s555_s4 }
 0x37e   :  { %v294_v21 = vpop.permute.xlu1 %293 }
 0x37f   :  { %v296_v22 = vmax.f32 %v290_v19, %v294_v21 }
 0x381   :  { %v298_v23 = vmul.f32 %v297_v20, %v296_v22 }
 0x383   :  { %v299_v24 = vsel %vm268_vm1, %v298_v23, 0.0 }
 0x384   :  { %v300_v25 = vrot.slane %v299_v24, 4 }
 0x386   :  { %v301_v26 = vadd.f32 %v300_v25, %v299_v24 }
 0x388   :  { %v302_v27 = vrot.slane %v301_v26, 2 }
 0x38a   :  { %v303_v28 = vadd.f32 %v302_v27, %v301_v26 }
 0x38c   :  { %v304_v29 = vrot.slane %v303_v28, 1 }
 0x38e   :  { %v305_v30 = vadd.f32 %v304_v29, %v303_v28 }
 0x390   :  { %372 = vrot.lane.b32.xlu1 %v305_v30, %s556_s3  ;;  %314 = vrot.lane.b32.xlu2 %v305_v30, %s557_s14  ;;  %v309_v31 = vsel %vm308_vm2, %v305_v30, 0.0 }
 0x391   :  { %310 = vadd.xlane.f32.xlu0 %v309_v31 }
 0x398   :  { %379 = vrot.lane.b32.xlu2 %v305_v30, %s558_s15 }
 0x3ea   :  { %v315_v32 = vpop.permute.xlu2 %314 }
 0x3eb   :  { %v318_v33 = vsel %vm317_vm3, %v315_v32, 0.0 }
 0x3ec   :  { %319 = vadd.xlane.f32.xlu1 %v318_v33 }
 0x3f2   :  { %v380_v36 = vpop.permute.xlu2 %379 }
 0x3f3   :  { %v382_v37 = vsel %vm317_vm3, %v380_v36, 0.0 }
 0x402   :  { %v373_v34 = vpop.permute.xlu1 %372 }
 0x403   :  { %v375_v35 = vsel %vm308_vm2, %v373_v34, 0.0 }
 0x404   :  { %376 = vadd.xlane.f32.xlu2 %v375_v35  ;;  %v311_v39 = vpop.xlane.xlu0 %310 }
 0x405   :  { %v312_v42 = vadd.f32 %v311_v39, %v306_v38 }
 0x40c   :  { %383 = vadd.xlane.f32.xlu2 %v382_v37 }
 0x45f   :  { %v320_v41 = vpop.xlane.xlu1 %319 }
 0x460   :  { %v321_v43 = vadd.f32 %v320_v41, %v307_v40 }
 0x462   :  { %v322_v44 = vmul.f32 %v321_v43, %v312_v42 }
 0x464   :  { %v324_v45 = vsub.f32 0.0, %v322_v44  ;;  %v343_v46 = vmul.f32 1.442695, %v322_v44  ;;  %vm323_vm12 = vcmp.ge.f32.partialorder %v322_v44, 0.0 }
 0x466   :  { %v325_v47 = vmul.f32 1.442695, %v324_v45  ;;  %478 = vpow2.f32 %v343_v46 }
 0x468   :  { %480 = vpow2.f32 %v325_v47  ;;  %v559_v47 = vmov 0.0  }
 0x46c   :  { %v479_v48 = vpop.eup %478 }
 0x46d   :  { %v345_v49 = vadd.f32 1.0, %v479_v48 }
 0x46e   :  { %v481_v50 = vpop.eup %480 }
 0x46f   :  { %v327_v51 = vadd.f32 1.0, %v481_v50  ;;  %482 = vrcp.f32 %v345_v49  ;;  %v357_v58 = vand.u32 2147483648, %v345_v49  ;;  %v355_v61 = vand.u32 2147483647, %v345_v49 }
 0x470   :  { %vm351_vm6 = vweird.f32 %v345_v49 }
 0x471   :  { %484 = vrcp.f32 %v327_v51  ;;  %v337_v62 = vand.u32 2147483647, %v327_v51  ;;  %v339_v63 = vand.u32 2147483648, %v327_v51  ;;  %v358_v2 = vor.u32 1.1754944e-38, %v357_v58 }
 0x472   :  { %vm333_vm8 = vweird.f32 %v327_v51  ;;  %vm356_vm9 = vcmp.eq.f32.partialorder %v355_v61, 8.507059e+37 }
 0x473   :  { %vm338_vm11 = vcmp.eq.f32.partialorder %v337_v62, 8.507059e+37  ;;  %v340_v7 = vor.u32 1.1754944e-38, %v339_v63 }
 0x475   :  { %v483_v52 = vpop.eup %482 }
 0x476   :  { %v347_v53 = vmul.f32 %v483_v52, %v345_v49  ;;  %vm352_vm4 = vweird.f32 %v483_v52 }
 0x477   :  { %v485_v54 = vpop.eup %484  ;;  %v377_v55 = vpop.xlane.xlu2 %376  ;;  %vm353_vm7 = vmor %vm351_vm6, %vm352_vm4  ;;  %vm362_vm6 = vcmp.eq.s32.totalorder %v626_v5, 0 }
 0x478   :  { %v329_v56 = vmul.f32 %v485_v54, %v327_v51  ;;  %v348_v57 = vsub.f32 1.0, %v347_v53  ;;  %vm334_vm5 = vweird.f32 %v485_v54  ;;  %v378_v9 = vadd.f32 %v377_v55, %v306_v38 }
 0x479   :  { %vm335_vm10 = vmor %vm333_vm8, %vm334_vm5  ;;  %vm436_vm8 = vcmask 8192  }
 0x47a   :  { %v330_v59 = vsub.f32 1.0, %v329_v56  ;;  %v349_v60 = vmul.f32 %v483_v52, %v348_v57 }
 0x47c   :  { %v331_v0 = vmul.f32 %v485_v54, %v330_v59  ;;  %v350_v1 = vadd.f32 %v483_v52, %v349_v60 }
 0x47e   :  { %v332_v3 = vadd.f32 %v485_v54, %v331_v0  ;;  %v354_v4 = vsel %vm353_vm7, %v483_v52, %v350_v1  ;;  %vm426_vm7 = vcmp.eq.s32.totalorder %v626_v5, 1 }
 0x47f   :  { %v384_v6 = vpop.xlane.xlu2 %383  ;;  %v359_v8 = vsel %vm356_vm9, %v358_v2, %v354_v4  ;;  %v427_v49 = vsel %vm426_vm7, 1.0, %v559_v47 }
 0x480   :  { %v385_v10 = vadd.f32 %v384_v6, %v307_v40  ;;  %v336_v11 = vsel %vm335_vm10, %v485_v54, %v332_v3  ;;  %v360_v12 = vmul.f32 %v479_v48, %v359_v8  ;;  %v363_v48 = vsel %vm362_vm6, 1.0, %v559_v47 }
 0x481   :  { %v341_v13 = vsel %vm338_vm11, %v340_v7, %v336_v11 }
 0x482   :  { %v386_v14 = vmul.f32 %v385_v10, %v378_v9  ;;  %v361_v15 = vsel %vm323_vm12, %v341_v13, %v360_v12 }
 0x483   :  { %366 = vperm.xlu0 %477, %v361_v15  }
 0x484   :  { %v388_v16 = vsub.f32 0.0, %v386_v14  ;;  %v407_v17 = vmul.f32 1.442695, %v386_v14  ;;  %vm387_vm5 = vcmp.ge.f32.partialorder %v386_v14, 0.0 }
 0x486   :  { %v389_v18 = vmul.f32 1.442695, %v388_v16  ;;  %486 = vpow2.f32 %v407_v17 }
 0x488   :  { %488 = vpow2.f32 %v389_v18 }
 0x48c   :  { %v487_v19 = vpop.eup %486 }
 0x48d   :  { %v409_v20 = vadd.f32 1.0, %v487_v19 }
 0x48e   :  { %v489_v21 = vpop.eup %488 }
 0x48f   :  { %v391_v22 = vadd.f32 1.0, %v489_v21  ;;  %490 = vrcp.f32 %v409_v20  ;;  %v421_v28 = vand.u32 2147483648, %v409_v20  ;;  %v419_v31 = vand.u32 2147483647, %v409_v20 }
 0x490   :  { %vm415_vm14 = vweird.f32 %v409_v20 }
 0x491   :  { %492 = vrcp.f32 %v391_v22  ;;  %v403_v32 = vand.u32 2147483648, %v391_v22  ;;  %v401_v34 = vand.u32 2147483647, %v391_v22  ;;  %v422_v36 = vor.u32 1.1754944e-38, %v421_v28 }
 0x492   :  { %vm397_vm1 = vweird.f32 %v391_v22  ;;  %vm420_vm2 = vcmp.eq.f32.partialorder %v419_v31, 8.507059e+37 }
 0x493   :  { %v404_v39 = vor.u32 1.1754944e-38, %v403_v32  ;;  %vm402_vm4 = vcmp.eq.f32.partialorder %v401_v34, 8.507059e+37 }
 0x495   :  { %v491_v23 = vpop.eup %490 }
 0x496   :  { %v411_v24 = vmul.f32 %v491_v23, %v409_v20  ;;  %vm416_vm13 = vweird.f32 %v491_v23 }
 0x497   :  { %v493_v25 = vpop.eup %492  ;;  %vm417_vm0 = vmor %vm415_vm14, %vm416_vm13 }
 0x498   :  { %v393_v26 = vmul.f32 %v493_v25, %v391_v22  ;;  %v412_v27 = vsub.f32 1.0, %v411_v24  ;;  %vm398_vm15 = vweird.f32 %v493_v25 }
 0x499   :  { %vm399_vm3 = vmor %vm397_vm1, %vm398_vm15 }
 0x49a   :  { %v394_v29 = vsub.f32 1.0, %v393_v26  ;;  %v413_v30 = vmul.f32 %v491_v23, %v412_v27 }
 0x49c   :  { %v395_v33 = vmul.f32 %v493_v25, %v394_v29  ;;  %v414_v35 = vadd.f32 %v491_v23, %v413_v30 }
 0x49e   :  { %v396_v37 = vadd.f32 %v493_v25, %v395_v33  ;;  %v418_v38 = vsel %vm417_vm0, %v491_v23, %v414_v35 }
 0x49f   :  { %v423_v40 = vsel %vm420_vm2, %v422_v36, %v418_v38 }
 0x4a0   :  { %v400_v41 = vsel %vm399_vm3, %v493_v25, %v396_v37  ;;  %v424_v42 = vmul.f32 %v487_v19, %v423_v40 }
 0x4a1   :  { %v405_v43 = vsel %vm402_vm4, %v404_v39, %v400_v41 }
 0x4a2   :  { %v425_v44 = vsel %vm387_vm5, %v405_v43, %v424_v42 }
 0x4a3   :  { %430 = vperm.xlu1 %476, %v425_v44  }
 0x4f5   :  { %v367_v45 = vpop.permute.xlu0 %366 }
 0x4f6   :  { %v369_v46 = vperm.slane %v367_v45, 0 }
 0x4f8   :  { %v370_v52 = vmul.f32 %v369_v46, %v363_v48 }
 0x515   :  { %v431_v50 = vpop.permute.xlu1 %430 }
 0x516   :  { %v433_v51 = vperm.slane %v431_v50, 0 }
 0x518   :  { %v434_v53 = vmul.f32 %v433_v51, %v427_v49 }
 0x51a   :  { %v435_v54 = vadd.f32 %v434_v53, %v370_v52 }
 0x51c   :  { %437 = vst.msk [vmem:[#allocation9] sm:$0x1] %vm436_vm8, %v435_v54 }
 0x51d   :  { %448 = dma.vmem_to_hbm [thread:$0]  %s444_s16, 16, %s446_s19, [#allocation8]  }
 0x51e   :  { %544 = dma.done.wait [#allocation8], 16  }
 0x51f   :  { %545 = vsyncadd [#allocation8], 4294967280 }
 0x520   :  { %453 = vsyncpa [#allocation7], 1 }
 0x521   :  { %454 = vsyncpa [#allocation8], 1 }

</bundles_post_ra>
